<compile_context>
chip_gen: v7x
topology: tpu7x:2x2x1
jax: 0.10.0
libtpu: 0.0.40
codegen_flags: <defaults>
</compile_context>

<pallas_src>
import jax
import jax.numpy as jnp
from jax.experimental import pallas as pl
from jax.experimental.pallas import tpu as pltpu  # noqa: F401  (TPU backend)

# Module constants (scaled down to small synthetic sizes for the demo run;
# original module used BATCH_SIZE=128).
BATCH_SIZE = 8
EMBEDDING_SIZE = 50
OUTPUT_SIZE = 2
SEQ_LEN = 4
VOCAB = 16

LANE = 128  # TPU lane width — last dim padded to a multiple of this.


def attention_simple_kernel(q_ref, emb_ref, out_ref):
    # res[wi, b, :] = q[b, :] * embeddings[wi, :]   for every wi, b at once.
    # Pure VPU elementwise broadcast multiply on lane-dense (*, 128) tiles.
    out_ref[...] = emb_ref[...][:, None, :] * q_ref[...][None, :, :]


def attention_simple_forward(q, k, embeddings):
    """Replicates the (truncated) AttentionSimple.forward hot path.

    For every word position wi in range(k.shape[1]) it computes
    q * embeddings[wi]; the stacked results (S, B, E) are returned.
    (The original forward recomputes the identical value once per batch
    element and then discards everything, returning None.)
    """
    B, E = q.shape
    S = k.shape[1]

    # Lane-dense padding of the embedding dim.
    E_pad = ((E + LANE - 1) // LANE) * LANE
    q_p = jnp.pad(q, ((0, 0), (0, E_pad - E)))
    # Only the first S rows of the table are ever touched: wi indexes by
    # sequence position, exactly like the truncated PyTorch code.
    emb_p = jnp.pad(embeddings[:S], ((0, 0), (0, E_pad - E)))

    out = pl.pallas_call(
        attention_simple_kernel,
        out_shape=jax.ShapeDtypeStruct((S, B, E_pad), q.dtype),
        # No grid: one invocation, whole-array blocks resident in VMEM.
        # Footprint here is a few KiB — far below any VMEM limit (incl. v7x).
        in_specs=[
            pl.BlockSpec((B, E_pad), lambda: (0, 0)),      # q
            pl.BlockSpec((S, E_pad), lambda: (0, 0)),      # embeddings[:S]
        ],
        out_specs=pl.BlockSpec((S, B, E_pad), lambda: (0, 0, 0)),
    )(q_p, emb_p)

    # Strip the lane padding back off.
    return out[..., :E]


if __name__ == "__main__":
    key = jax.random.PRNGKey(0)
    kq, kk, ke, kw, kb = jax.random.split(key, 5)

    q = jax.random.normal(kq, (BATCH_SIZE, EMBEDDING_SIZE), jnp.float32)
    k = jax.random.randint(kk, (BATCH_SIZE, SEQ_LEN), 0, VOCAB, dtype=jnp.int32)
    embeddings = jax.random.normal(ke, (VOCAB, EMBEDDING_SIZE), jnp.float32)

    # Deterministic params for self.linear = nn.Linear(EMBEDDING_SIZE, OUTPUT_SIZE).
    bound = 1.0 / (EMBEDDING_SIZE ** 0.5)
    linear_w = jax.random.uniform(kw, (OUTPUT_SIZE, EMBEDDING_SIZE),
                                  jnp.float32, -bound, bound)
    linear_b = jax.random.uniform(kb, (OUTPUT_SIZE,), jnp.float32, -bound, bound)
    # TODO(synk): self.linear is declared but never applied in the truncated
    # PyTorch forward (which returns None), so it is initialized but unused here.

    out = attention_simple_forward(q, k, embeddings)
    out = jax.block_until_ready(out)

    # Pure-JAX reference for the same computation.
    ref = q[None, :, :] * embeddings[:SEQ_LEN, None, :]
    assert out.shape == (SEQ_LEN, BATCH_SIZE, EMBEDDING_SIZE)
    assert jnp.allclose(out, ref, atol=1e-6), "kernel mismatch vs reference"

    print("KERNEL_OK")
</pallas_src>

<mosaic_0001>
module attributes {stable_mosaic.version = 11 : i64} {
  func.func @attention_simple_kernel(%arg0: memref<8x128xf32, #tpu.memory_space<vmem>>, %arg1: memref<4x128xf32, #tpu.memory_space<vmem>>, %arg2: memref<4x8x128xf32, #tpu.memory_space<vmem>>) attributes {dimension_semantics = [], scalar_prefetch = 0 : i64, scratch_operands = 0 : i64, tpu.core_type = #tpu.core_type<tc>} {
    %c0 = arith.constant 0 : index
    %c0_0 = arith.constant 0 : index
    %0 = vector.load %arg1[%c0, %c0_0] : memref<4x128xf32, #tpu.memory_space<vmem>>, vector<4x128xf32>
    %1 = vector.shape_cast %0 : vector<4x128xf32> to vector<4x1x128xf32>
    %c0_1 = arith.constant 0 : index
    %c0_2 = arith.constant 0 : index
    %2 = vector.load %arg0[%c0_1, %c0_2] : memref<8x128xf32, #tpu.memory_space<vmem>>, vector<8x128xf32>
    %3 = vector.shape_cast %2 : vector<8x128xf32> to vector<1x8x128xf32>
    %4 = vector.broadcast %1 : vector<4x1x128xf32> to vector<4x8x128xf32>
    %5 = vector.broadcast %3 : vector<1x8x128xf32> to vector<4x8x128xf32>
    %6 = arith.mulf %4, %5 : vector<4x8x128xf32>
    %c0_3 = arith.constant 0 : index
    %c0_4 = arith.constant 0 : index
    %c0_5 = arith.constant 0 : index
    %7 = vector.load %arg2[%c0_3, %c0_4, %c0_5] : memref<4x8x128xf32, #tpu.memory_space<vmem>>, vector<4x8x128xf32>
    tpu.vector_store %arg2[%c0_3, %c0_4, %c0_5], %6 {strides = array<i32>} : memref<4x8x128xf32, #tpu.memory_space<vmem>>, vector<4x8x128xf32>,
    return
  }
}

</mosaic_0001>

<bundles_post_ra>
// kernel: tpu_custom_call.1
= control target key start
LH: loop header
LB: loop body
LE: loop exit
PB: predicated region body
PF: predicated region fallthrough
CT: control target
= control target key end

     0   :  { %7 = vsyncpa [#allocation3], 0  ;;  %s245_s0 = inlined_call_operand.hbm [shape: f32[8,128], index: 0, kind: input, shape index: {}]   ;;  %s246_s1 = inlined_call_operand.hbm [shape: f32[4,128], index: 1, kind: input, shape index: {}]   ;;  %s247_s2 = inlined_call_operand.hbm [shape: f32[4,8,128], index: 2, kind: output, shape index: {}]  }
   0x1   :  { %8 = vsyncpa [#allocation6], 0 }
   0x2   :  { %9 = vsyncpa [#allocation4], 0  ;;  %s188_s9 = smov [#allocation2]   ;;  %s189_s11 = smov [#allocation5]  }
   0x3   :  { %s16_s10 = sshll.u32 %s188_s9, 4  ;;  %s26_s12 = sshll.u32 %s189_s11, 4  ;;  %s17_s10 = int_to_ptr.vmem [resolvable:$true] %s16_s10  ;;  %s27_s12 = int_to_ptr.vmem [resolvable:$true] %s26_s12 }
   0x4   :  { %s116_s15 = scalar_lea.hbm %s245_s0, 128 }
   0x5   :  { %p117_p0 = scmp.ne.s32.totalorder %s245_s0, %s116_s15  ;;  %p120_p1 = scmp.lt.u32.totalorder %s116_s15, %s245_s0 }
   0x7   :  { %p122_p2 = pnand %p120_p1, %p117_p0 }
   0x9   :  { %125 = shalt.err (!%p122_p2)
}
   0xa   :  { %s126_s20 = scalar_lea.vmem %s17_s10, 128  ;;  %p131_p4 = scmp.lt.s32.totalorder %s17_s10, %s17_s10 }
   0xb   :  { %p127_p3 = scmp.ne.s32.totalorder %s17_s10, %s126_s20  ;;  %p132_p5 = scmp.lt.s32.totalorder %s126_s20, %s126_s20 }
   0xd   :  { %p133_p6 = por %p132_p5, %p131_p4 }
   0xf   :  { %p134_p7 = pnand %p133_p6, %p127_p3 }
  0x11   :  { %137 = shalt.err (!%p134_p7)
}
  0x12   :  { %19 = dma.hbm_to_vmem [thread:$0]  %s245_s0, 128, %s17_s10, [#allocation3]  }
  0x13   :  { %s138_s25 = scalar_lea.hbm %s246_s1, 64 }
  0x14   :  { %p139_p8 = scmp.ne.s32.totalorder %s246_s1, %s138_s25  ;;  %p142_p9 = scmp.lt.u32.totalorder %s138_s25, %s246_s1 }
  0x16   :  { %p144_p10 = pnand %p142_p9, %p139_p8 }
  0x18   :  { %147 = shalt.err (!%p144_p10)
}
  0x19   :  { %s148_s30 = scalar_lea.vmem %s27_s12, 64  ;;  %p153_p12 = scmp.lt.s32.totalorder %s27_s12, %s27_s12 }
  0x1a   :  { %p149_p11 = scmp.ne.s32.totalorder %s27_s12, %s148_s30  ;;  %p154_p13 = scmp.lt.s32.totalorder %s148_s30, %s148_s30 }
  0x1c   :  { %p155_p0 = por %p154_p13, %p153_p12 }
  0x1e   :  { %p156_p1 = pnand %p155_p0, %p149_p11 }
  0x20   :  { %159 = shalt.err (!%p156_p1)
}
  0x21   :  { %29 = dma.hbm_to_vmem [thread:$0]  %s246_s1, 64, %s27_s12, [#allocation6]  }
  0x22   :  { %182 = dma.done.wait [#allocation3], 128  }
  0x23   :  { %183 = vsyncadd [#allocation3], 4294967168 }
  0x24   :  { %184 = dma.done.wait [#allocation6], 64  }
  0x25   :  { %185 = vsyncadd [#allocation6], 4294967232  ;;  %v49_v0 = vlaneseq  ;;  %v190_v1 = vmov 1966171168   ;;  %v62_v10 = vld [vmem:[#allocation2] sm:$0xff]  ;;  %s191_s1 = smov [#allocation7]  }
  0x26   :  { %v47_v2 = vunpack.c.l.s4 %v190_v1  ;;  %v109_v7 = vld.sshfl [vmem:[#allocation5] sm:$0x33 pattern:$0x75316420]  ;;  %s96_s4 = sshll.u32 %s191_s1, 4  ;;  %s97_s4 = int_to_ptr.vmem [resolvable:$true] %s96_s4 }
  0x27   :  { %v50_v3 = vshrl.u32 %v49_v0, 7  ;;  %v45_v9 = vcombine.high %v109_v7, %v109_v7  ;;  %s160_s5 = scalar_lea.vmem %s97_s4, 512  ;;  %p165_p3 = scmp.lt.s32.totalorder %s97_s4, %s97_s4 }
  0x28   :  { %v48_v4 = vunpack.c.0.s8 %v47_v2  ;;  %p161_p2 = scmp.ne.s32.totalorder %s97_s4, %s160_s5  ;;  %p166_p4 = scmp.lt.s32.totalorder %s160_s5, %s160_s5 }
  0x29   :  { %v65_v6 = vsub.s32 0, %v50_v3 }
  0x2a   :  { %v51_v5 = vsub.s32 %v48_v4, %v50_v3  ;;  %p167_p5 = por %p166_p4, %p165_p3 }
  0x2c   :  { %v52_v8 = vrot.slane %v109_v7, %v51_v5  ;;  %v59_v12 = vrot.slane %v45_v9, %v51_v5  ;;  %p168_p6 = pnand %p167_p5, %p161_p2 }
  0x2e   :  { %v66_v11 = vrot.slane %v52_v8, %v65_v6  ;;  %v60_v13 = vcombine.high %v52_v8, %v52_v8  ;;  %v70_v15 = vrot.slane %v59_v12, %v65_v6  ;;  %v61_v17 = vcombine.high %v59_v12, %v59_v12 }
  0x30   :  { %v83_v14 = vmul.f32 %v66_v11, %v62_v10  ;;  %v74_v16 = vrot.slane %v60_v13, %v65_v6  ;;  %v84_v18 = vmul.f32 %v70_v15, %v62_v10  ;;  %v78_v20 = vrot.slane %v61_v17, %v65_v6 }
  0x32   :  { %87 = vst [vmem:[#allocation7] sm:$0xff] %v83_v14  ;;  %v85_v19 = vmul.f32 %v74_v16, %v62_v10  ;;  %88 = vst [vmem:[#allocation7 + $0x8] sm:$0xff] %v84_v18  ;;  %v86_v21 = vmul.f32 %v78_v20, %v62_v10 }
  0x34   :  { %89 = vst [vmem:[#allocation7 + $0x10] sm:$0xff] %v85_v19  ;;  %90 = vst [vmem:[#allocation7 + $0x18] sm:$0xff] %v86_v21 }
  0x35   :  { %171 = shalt.err (!%p168_p6)
}
  0x36   :  { %s172_s8 = scalar_lea.hbm %s247_s2, 512 }
  0x37   :  { %p173_p7 = scmp.ne.s32.totalorder %s247_s2, %s172_s8  ;;  %p176_p8 = scmp.lt.u32.totalorder %s172_s8, %s247_s2 }
  0x39   :  { %p178_p9 = pnand %p176_p8, %p173_p7 }
  0x3b   :  { %181 = shalt.err (!%p178_p9)
}
  0x3c   :  { %s192_s13 = smov 128   ;;  %s193_s14 = smov 8  }
  0x3d   :  { %102 = dma.vmem_to_hbm [thread:$0]  %s97_s4, 512, %s247_s2, [#allocation4], %s192_s13, %s192_s13, %s193_s14  }
  0x3e   :  { %186 = dma.done.wait [#allocation4], 512  }
  0x3f   :  { %187 = vsyncadd [#allocation4], 4294966784 }
  0x40   :  { %106 = vsyncpa [#allocation3], 1 }
  0x41   :  { %107 = vsyncpa [#allocation6], 1 }
  0x42   :  { %108 = vsyncpa [#allocation4], 1 }

</bundles_post_ra>
